<compile_context>
chip_gen: v7x
topology: tpu7x:2x2x1
jax: 0.10.0
libtpu: 0.0.40
codegen_flags: <defaults>
</compile_context>

<pallas_src>
import jax
import jax.numpy as jnp
from jax import lax
from jax.experimental import pallas as pl
from jax.experimental.pallas import tpu as pltpu


def _linear_add_kernel(x_ref, w_ref, other_ref, o_ref):
    # x: (B, 8) f32, w: (8, 8) f32 [out_features, in_features], other: (1, 8) f32
    x = x_ref[...]
    w = w_ref[...]
    other = other_ref[...]
    # x @ W.T expressed as a contraction on dim 1 of both operands — goes
    # straight to the MXU with f32 accumulation, no explicit transpose.
    v1 = lax.dot_general(
        x, w,
        dimension_numbers=(((1,), (1,)), ((), ())),
        preferred_element_type=jnp.float32,
    )
    o_ref[...] = (v1 + other).astype(o_ref.dtype)


def model_forward(x1, weight, other):
    """x1: (B, 8), weight: (8, 8) PyTorch layout (out, in), other: (1, 8)."""
    B, _ = x1.shape
    Fout = weight.shape[0]
    return pl.pallas_call(
        _linear_add_kernel,
        out_shape=jax.ShapeDtypeStruct((B, Fout), jnp.float32),
        in_specs=[
            pl.BlockSpec(memory_space=pltpu.MemorySpace.VMEM),
            pl.BlockSpec(memory_space=pltpu.MemorySpace.VMEM),
            pl.BlockSpec(memory_space=pltpu.MemorySpace.VMEM),
        ],
        out_specs=pl.BlockSpec(memory_space=pltpu.MemorySpace.VMEM),
    )(x1, weight, other)


if __name__ == "__main__":
    key = jax.random.PRNGKey(0)
    k_x, k_w, k_other = jax.random.split(key, 3)

    # Shapes implied by the module: Linear(8, 8, bias=False), inputs (1, 8)
    x1 = jax.random.normal(k_x, (1, 8), dtype=jnp.float32)
    # PyTorch Linear stores weight as (out_features, in_features)
    weight = jax.random.normal(k_w, (8, 8), dtype=jnp.float32) * 0.1
    other = jax.random.normal(k_other, (1, 8), dtype=jnp.float32)

    out = jax.block_until_ready(model_forward(x1, weight, other))

    # Reference check in plain JAX
    ref = x1 @ weight.T + other
    assert out.shape == (1, 8)
    assert jnp.allclose(out, ref, atol=1e-5, rtol=1e-5)

    print("KERNEL_OK")
</pallas_src>

<mosaic_0001>
module attributes {stable_mosaic.version = 11 : i64} {
  func.func @_linear_add_kernel(%arg0: memref<1x8xf32, #tpu.memory_space<vmem>>, %arg1: memref<8x8xf32, #tpu.memory_space<vmem>>, %arg2: memref<1x8xf32, #tpu.memory_space<vmem>>, %arg3: memref<1x8xf32, #tpu.memory_space<vmem>>) attributes {dimension_semantics = [], scalar_prefetch = 0 : i64, scratch_operands = 0 : i64, tpu.core_type = #tpu.core_type<tc>} {
    %c0 = arith.constant 0 : index
    %c0_0 = arith.constant 0 : index
    %0 = vector.load %arg0[%c0, %c0_0] : memref<1x8xf32, #tpu.memory_space<vmem>>, vector<1x8xf32>
    %c0_1 = arith.constant 0 : index
    %c0_2 = arith.constant 0 : index
    %1 = vector.load %arg1[%c0_1, %c0_2] : memref<8x8xf32, #tpu.memory_space<vmem>>, vector<8x8xf32>
    %c0_3 = arith.constant 0 : index
    %c0_4 = arith.constant 0 : index
    %2 = vector.load %arg2[%c0_3, %c0_4] : memref<1x8xf32, #tpu.memory_space<vmem>>, vector<1x8xf32>
    %cst = arith.constant dense<0.000000e+00> : vector<1x8xf32>
    %3 = tpu.matmul %0, %1, %cst {dimension_numbers = #tpu.dot_dimension_numbers<[1], [1], [0], [0], [0, 0, 1, 0], [], []>} : vector<1x8xf32>, vector<8x8xf32>, vector<1x8xf32> -> vector<1x8xf32>
    %4 = arith.addf %3, %2 : vector<1x8xf32>
    %c0_5 = arith.constant 0 : index
    %c0_6 = arith.constant 0 : index
    %5 = vector.load %arg3[%c0_5, %c0_6] : memref<1x8xf32, #tpu.memory_space<vmem>>, vector<1x8xf32>
    tpu.vector_store %arg3[%c0_5, %c0_6], %4 {strides = array<i32>} : memref<1x8xf32, #tpu.memory_space<vmem>>, vector<1x8xf32>,
    return
  }
}

</mosaic_0001>

<bundles_post_ra>
// kernel: tpu_custom_call.1
= control target key start
LH: loop header
LB: loop body
LE: loop exit
PB: predicated region body
PF: predicated region fallthrough
CT: control target
= control target key end

     0   :  { %8 = vsyncpa [#allocation3], 0  ;;  %s287_s0 = inlined_call_operand.hbm [shape: f32[1,8], index: 0, kind: input, shape index: {}]   ;;  %s288_s1 = inlined_call_operand.hbm [shape: f32[8,8], index: 1, kind: input, shape index: {}]   ;;  %s289_s2 = inlined_call_operand.vmem [shape: f32[1,8], index: 2, kind: input, shape index: {}]   ;;  %s290_s3 = inlined_call_operand.hbm [shape: f32[1,8], index: 3, kind: output, shape index: {}]  }
   0x1   :  { %9 = vsyncpa [#allocation6], 0 }
   0x2   :  { %10 = vsyncpa [#allocation4], 0  ;;  %s223_s12 = smov [#allocation2]   ;;  %s224_s14 = smov [#allocation5]  }
   0x3   :  { %s17_s13 = sshll.u32 %s223_s12, 4  ;;  %s27_s15 = sshll.u32 %s224_s14, 4  ;;  %s18_s13 = int_to_ptr.vmem [resolvable:$true] %s17_s13  ;;  %s28_s15 = int_to_ptr.vmem [resolvable:$true] %s27_s15 }
   0x4   :  { %s151_s18 = scalar_lea.hbm %s287_s0, 16 }
   0x5   :  { %p152_p0 = scmp.ne.s32.totalorder %s287_s0, %s151_s18  ;;  %p155_p1 = scmp.lt.u32.totalorder %s151_s18, %s287_s0 }
   0x7   :  { %p157_p2 = pnand %p155_p1, %p152_p0 }
   0x9   :  { %160 = shalt.err (!%p157_p2)
}
   0xa   :  { %s161_s23 = scalar_lea.vmem %s18_s13, 16  ;;  %s165_s24 = scalar_lea.vmem %s18_s13, 32 }
   0xb   :  { %p162_p3 = scmp.ne.s32.totalorder %s18_s13, %s161_s23  ;;  %p166_p4 = scmp.lt.s32.totalorder %s18_s13, %s18_s13 }
   0xc   :  { %p167_p5 = scmp.lt.s32.totalorder %s165_s24, %s161_s23 }
   0xe   :  { %p168_p6 = por %p167_p5, %p166_p4 }
  0x10   :  { %p169_p7 = pnand %p168_p6, %p162_p3 }
  0x12   :  { %172 = shalt.err (!%p169_p7)
}
  0x13   :  { %20 = dma.hbm_to_vmem [thread:$0]  %s287_s0, 16, %s18_s13, [#allocation3]  }
  0x14   :  { %s173_s29 = scalar_lea.hbm %s288_s1, 128 }
  0x15   :  { %p174_p8 = scmp.ne.s32.totalorder %s288_s1, %s173_s29  ;;  %p177_p9 = scmp.lt.u32.totalorder %s173_s29, %s288_s1 }
  0x17   :  { %p179_p10 = pnand %p177_p9, %p174_p8 }
  0x19   :  { %182 = shalt.err (!%p179_p10)
}
  0x1a   :  { %s183_s7 = scalar_lea.vmem %s28_s15, 128  ;;  %p188_p12 = scmp.lt.s32.totalorder %s28_s15, %s28_s15 }
  0x1b   :  { %p184_p11 = scmp.ne.s32.totalorder %s28_s15, %s183_s7  ;;  %p189_p13 = scmp.lt.s32.totalorder %s183_s7, %s183_s7 }
  0x1d   :  { %p190_p0 = por %p189_p13, %p188_p12 }
  0x1f   :  { %p191_p1 = pnand %p190_p0, %p184_p11 }
  0x21   :  { %194 = shalt.err (!%p191_p1)
}
  0x22   :  { %30 = dma.hbm_to_vmem [thread:$0]  %s288_s1, 128, %s28_s15, [#allocation6]  }
  0x23   :  { %217 = dma.done.wait [#allocation3], 16  }
  0x24   :  { %218 = vsyncadd [#allocation3], 4294967280 }
  0x25   :  { %219 = dma.done.wait [#allocation6], 128  }
  0x26   :  { %220 = vsyncadd [#allocation6], 4294967168  ;;  %v225_v0 = vmov 0.0   ;;  %vm226_vm0 = vmmov 0   ;;  %vm42_vm1 = vcmask 64512   ;;  %v40_v1 = vld [vmem:[#allocation5] sm:$0xff] }
  0x27   :  { %141 = vmatprep.subr.mxu0 %v225_v0  ;;  %143 = vmatprep.mubr.msk.f32.mxu0 %vm226_vm0, %v225_v0  ;;  %v39_v2 = vld [vmem:[#allocation2] sm:$0x1]  ;;  %s227_s11 = smov [#allocation7]   ;;  %vm119_vm2 = vcmask 57344  }
  0x28   :  { %142 = vmatpush3.xpose.msk.msra.mxu0 %vm42_vm1, %v40_v1  ;;  %v41_v3 = vld [vmem:[%s289_s2] sm:$0x1]  ;;  %s127_s12 = sshll.u32 %s227_s11, 4  ;;  %s128_s12 = int_to_ptr.vmem [resolvable:$true] %s127_s12 }
  0x29   :  { %s195_s1 = scalar_lea.vmem %s128_s12, 16  ;;  %s199_s13 = scalar_lea.vmem %s128_s12, 32 }
  0x2a   :  { %p196_p2 = scmp.ne.s32.totalorder %s128_s12, %s195_s1  ;;  %p200_p3 = scmp.lt.s32.totalorder %s128_s12, %s128_s12 }
  0x2b   :  { %144 = vmatmul.mubr.msk.f32.vlgmr.msra.gmra.mrb[0].mxu0 %vm42_vm1, %v39_v2  ;;  %p201_p4 = scmp.lt.s32.totalorder %s199_s13, %s195_s1 }
  0x2d   :  { %p202_p5 = por %p201_p4, %p200_p3 }
  0x2f   :  { %p203_p6 = pnand %p202_p5, %p196_p2 }
  0xfe   :  { %v115_v4 = vpop.f32.mrb[0].mxu0 }
  0xff   :  { %v116_v5 = vadd.f32 %v115_v4, %v41_v3  ;;  %v145_v6 = vpop.f32.mrb[1].mxu0 }
 0x101   :  { %120 = vst.msk [vmem:[#allocation7] sm:$0x1] %vm119_vm2, %v116_v5 }
 0x102   :  { %206 = shalt.err (!%p203_p6)
}
 0x103   :  { %s207_s2 = scalar_lea.hbm %s290_s3, 16 }
 0x104   :  { %p208_p7 = scmp.ne.s32.totalorder %s290_s3, %s207_s2  ;;  %p211_p8 = scmp.lt.u32.totalorder %s207_s2, %s290_s3 }
 0x106   :  { %p213_p9 = pnand %p211_p8, %p208_p7 }
 0x108   :  { %216 = shalt.err (!%p213_p9)
}
 0x109   :  { %130 = dma.vmem_to_hbm [thread:$0]  %s128_s12, 16, %s290_s3, [#allocation4]  }
 0x10a   :  { %221 = dma.done.wait [#allocation4], 16  }
 0x10b   :  { %222 = vsyncadd [#allocation4], 4294967280 }
 0x10c   :  { %134 = vsyncpa [#allocation3], 1 }
 0x10d   :  { %135 = vsyncpa [#allocation6], 1 }
 0x10e   :  { %136 = vsyncpa [#allocation4], 1 }

</bundles_post_ra>
